<compile_context>
chip_gen: v5e
topology: v5e:2x2
jax: 0.10.0
libtpu: 0.0.40
codegen_flags: <defaults>
</compile_context>

<pallas_src>
import math

import jax
import jax.numpy as jnp
from jax import lax
from jax.experimental import pallas as pl
from jax.experimental.pallas import tpu as pltpu

KERNEL_N = 5      # conv kernel size along the word-length axis
CONV_PAD = 2      # "same" padding along the word-length axis
CHUNK_SUB = 8     # sublane rows processed per inner-loop step (caps live vregs ~30)


def cnn_conv_maxpool_kernel(w_ref, b_ref, x_ref, o_ref):
    # w_ref: (KERNEL_N,) f32 SMEM                 -- Conv2d weight (1,1,5,1) as 5 scalars
    # b_ref: (1,)        f32 SMEM                 -- Conv2d bias
    # x_ref: (W, CPB, CHUNK_SUB, LANE) bf16 VMEM  -- char-position-major, lane-dense chars
    # o_ref: (CPB, CHUNK_SUB, LANE)    f32  VMEM  -- max over char positions of the conv
    n_word = x_ref.shape[0]
    n_chunk = x_ref.shape[1]
    ws = [w_ref[k] for k in range(KERNEL_N)]      # hoist SMEM scalar reads
    bias = b_ref[0]

    def conv_max_chunk(c):
        # Rolling cache: every char position is loaded + bf16->f32 cast exactly once per
        # chunk; regalloc keeps at most KERNEL_N casted chunks live at a time.
        xc = [None] * n_word

        def get(i):
            if xc[i] is None:
                xc[i] = x_ref[i, c, :, :].astype(jnp.float32)
            return xc[i]

        m = None
        for j in range(n_word):                   # output char positions (static unroll)
            s = None
            for k in range(KERNEL_N):             # taps; out-of-range taps hit zero pad
                i = j + k - CONV_PAD
                if 0 <= i < n_word:
                    t = ws[k] * get(i)
                    s = t if s is None else s + t
            m = s if m is None else jnp.maximum(m, s)   # running max, no (W,...) scratch
        o_ref[c, :, :] = m + bias                 # bias commutes with max -> added once

    if n_chunk == 1:
        conv_max_chunk(0)
    else:
        # fori_loop bounds the live set at large blocks; unroll=2 keeps LLO visibility.
        def body(c, carry):
            conv_max_chunk(c)
            return carry
        lax.fori_loop(0, n_chunk, body, 0, unroll=2)


def _pick_tiles(flat_elems, max_sub, max_lane):
    """Pick (sub_tile rows, lane_tile) so per-step blocks are large (amortize the
    ~0.35us/step pipeline overhead) while block-padding waste stays bounded and the
    grid keeps enough parallel steps for 2-TensorCore sharding on v7x."""
    lane = max_lane
    while lane > 128 and flat_elems < lane * 8:
        lane //= 2
    sub = max_sub
    while sub > CHUNK_SUB:
        block = sub * lane
        padded = pl.cdiv(flat_elems, block) * block
        if padded - flat_elems <= max(flat_elems // 8, block // 4):
            break
        sub //= 2
    rows = pl.cdiv(flat_elems, lane)
    while sub > 64 and pl.cdiv(rows, sub) < 8:    # prefer >= 8 grid steps when data allows
        sub //= 2
    return sub, lane


def cnn_forward(char_ids, lengths, char_embedding, conv_w, conv_b, *,
                max_sub_tile=256, max_lane_tile=512, storage_dtype=jnp.bfloat16):
    """char_ids: (B, S, W) int32 character indices (string->index tokenization done outside).
    char_embedding: (V, E) f32, conv_w: (KERNEL_N,) f32, conv_b: (1,) f32.
    Returns (data_embedded (B, S, E) f32, lengths (B,))."""
    B, S, W = char_ids.shape
    E = char_embedding.shape[1]
    N = B * S

    sub, lane = _pick_tiles(N * E, max_sub_tile, max_lane_tile)
    block_f = sub * lane                          # flat (word, emb-dim) elements per block

    # Pad the word axis so the flat feature axis (Np*E) tiles evenly into whole blocks;
    # padded words gather char index 0 and their outputs are sliced off below.
    pad_unit = block_f // math.gcd(block_f, E)
    Np = pl.cdiv(N, pad_unit) * pad_unit
    ids = jnp.pad(char_ids.reshape(N, W), ((0, Np - N), (0, 0)))

    # Embedding lookup (module's self.char_embedding gather), written directly in the
    # lane-dense (W, chunks, CHUNK_SUB, lane) layout (bit-identical to (W, Np*E) flat,
    # so the reshape is free). bf16 storage halves HBM bytes; kernel math stays f32.
    table = char_embedding.astype(storage_dtype)
    x = jnp.take(table, ids.T.reshape(-1), axis=0)                 # (W*Np, E)
    n_chunks_total = (Np * E) // (lane * CHUNK_SUB)
    x = x.reshape(W, n_chunks_total, CHUNK_SUB, lane)
    # dropout(p=0.1): eval-mode identity (see TODO at top)

    cpb = sub // CHUNK_SUB                        # sublane chunks per grid step
    num_blocks = n_chunks_total // cpb

    out = pl.pallas_call(
        cnn_conv_maxpool_kernel,
        out_shape=jax.ShapeDtypeStruct((n_chunks_total, CHUNK_SUB, lane), jnp.float32),
        grid_spec=pltpu.PrefetchScalarGridSpec(
            num_scalar_prefetch=0,
            grid=(num_blocks,),
            in_specs=[
                pl.BlockSpec(memory_space=pltpu.MemorySpace.SMEM),          # conv weights
                pl.BlockSpec(memory_space=pltpu.MemorySpace.SMEM),          # conv bias
                pl.BlockSpec((W, cpb, CHUNK_SUB, lane), lambda i: (0, i, 0, 0)),
            ],
            out_specs=pl.BlockSpec((cpb, CHUNK_SUB, lane), lambda i: (i, 0, 0)),
        ),
        compiler_params=pltpu.CompilerParams(dimension_semantics=("parallel",)),
    )(conv_w, conv_b, x)

    out = out.reshape(Np, E)[:N].reshape(B, S, E)
    return out, lengths


def _reference(char_ids, char_embedding, conv_w, conv_b):
    # pure-JAX reference of the same forward (bf16-rounded embeddings, f32 math):
    # conv along word-length (+bias) then max-pool over word-length.
    B, S, W = char_ids.shape
    E = char_embedding.shape[1]
    emb_q = char_embedding.astype(jnp.bfloat16).astype(jnp.float32)
    x = jnp.take(emb_q, char_ids.reshape(-1), axis=0).reshape(B * S, W, E)
    xp = jnp.pad(x, ((0, 0), (CONV_PAD, CONV_PAD), (0, 0)))
    ref = jnp.zeros((B * S, W, E), jnp.float32)
    for k in range(KERNEL_N):
        ref = ref + conv_w[k] * xp[:, k:k + W, :]
    return (ref + conv_b[0]).max(axis=1).reshape(B, S, E)


if __name__ == "__main__":
    key = jax.random.PRNGKey(0)
    k1, k2, k3, k4, k5 = jax.random.split(key, 5)

    # small shapes consistent with the module's forward
    B, S = 2, 8                 # batch_size, sentence length (<= max_sent_length=20)
    W_WORD = 15                 # max_word_length
    E = 16                      # char_embedding_dim
    V = 32                      # len(char_vocab)

    # deterministic parameters (module __init__ shapes)
    char_embedding = (jax.random.normal(k1, (V, E)) * (3.0 / E) ** 0.5).astype(jnp.float32)
    conv_w = (jax.random.normal(k2, (KERNEL_N,)) * 0.2).astype(jnp.float32)  # Conv2d (1,1,5,1)
    conv_b = (jax.random.normal(k3, (1,)) * 0.1).astype(jnp.float32)         # Conv2d bias (1,)

    # deterministic "tokenized" input: character indices per word
    char_ids = jax.random.randint(k4, (B, S, W_WORD), 0, V, dtype=jnp.int32)
    lengths = jnp.full((B,), S, dtype=jnp.int32)

    out, lens = cnn_forward(char_ids, lengths, char_embedding, conv_w, conv_b)
    out = jax.block_until_ready(out)
    ref = _reference(char_ids, char_embedding, conv_w, conv_b)
    assert out.shape == (B, S, E) and lens.shape == (B,)
    assert jnp.allclose(out, ref, atol=1e-4, rtol=1e-4)

    # second small config (max_sent_length-sized): exercises multi-block grid + padding slice
    B2, S2 = 4, 20
    char_ids2 = jax.random.randint(k5, (B2, S2, W_WORD), 0, V, dtype=jnp.int32)
    lengths2 = jnp.full((B2,), S2, dtype=jnp.int32)
    out2, _ = cnn_forward(char_ids2, lengths2, char_embedding, conv_w, conv_b)
    out2 = jax.block_until_ready(out2)
    ref2 = _reference(char_ids2, char_embedding, conv_w, conv_b)
    assert jnp.allclose(out2, ref2, atol=1e-4, rtol=1e-4)

    print("KERNEL_OK")
</pallas_src>

<mosaic_0001>
module attributes {stable_mosaic.version = 11 : i64} {
  func.func @cnn_conv_maxpool_kernel(%arg0: i32, %arg1: memref<5xf32, #tpu.memory_space<smem>>, %arg2: memref<1xf32, #tpu.memory_space<smem>>, %arg3: memref<15x1x8x128xbf16, #tpu.memory_space<vmem>>, %arg4: memref<1x8x128xf32, #tpu.memory_space<vmem>>) attributes {dimension_semantics = [#tpu.dimension_semantics<parallel>], iteration_bounds = array<i64: 1>, scalar_prefetch = 0 : i64, scratch_operands = 0 : i64, tpu.core_type = #tpu.core_type<tc>, window_params = [{transform_indices = @transform_0, window_bounds = array<i64: 5>}, {transform_indices = @transform_1, window_bounds = array<i64: 1>}, {transform_indices = @transform_2, window_bounds = array<i64: 15, 1, 8, 128>}, {transform_indices = @transform_3, window_bounds = array<i64: 1, 8, 128>}]} {
    %c0 = arith.constant 0 : index
    %0 = memref.load %arg1[%c0] : memref<5xf32, #tpu.memory_space<smem>>
    %c1 = arith.constant 1 : index
    %1 = memref.load %arg1[%c1] : memref<5xf32, #tpu.memory_space<smem>>
    %c2 = arith.constant 2 : index
    %2 = memref.load %arg1[%c2] : memref<5xf32, #tpu.memory_space<smem>>
    %c3 = arith.constant 3 : index
    %3 = memref.load %arg1[%c3] : memref<5xf32, #tpu.memory_space<smem>>
    %c4 = arith.constant 4 : index
    %4 = memref.load %arg1[%c4] : memref<5xf32, #tpu.memory_space<smem>>
    %c0_0 = arith.constant 0 : index
    %5 = memref.load %arg2[%c0_0] : memref<1xf32, #tpu.memory_space<smem>>
    %c0_1 = arith.constant 0 : index
    %c0_2 = arith.constant 0 : index
    %c0_3 = arith.constant 0 : index
    %c0_4 = arith.constant 0 : index
    %6 = vector.load %arg3[%c0_1, %c0_2, %c0_3, %c0_4] : memref<15x1x8x128xbf16, #tpu.memory_space<vmem>>, vector<1x1x8x128xbf16>
    %7 = vector.shape_cast %6 : vector<1x1x8x128xbf16> to vector<8x128xbf16>
    %8 = arith.extf %7 : vector<8x128xbf16> to vector<8x128xf32>
    %9 = vector.broadcast %2 : f32 to vector<8x128xf32>
    %10 = arith.mulf %9, %8 : vector<8x128xf32>
    %c1_5 = arith.constant 1 : index
    %c0_6 = arith.constant 0 : index
    %c0_7 = arith.constant 0 : index
    %c0_8 = arith.constant 0 : index
    %11 = vector.load %arg3[%c1_5, %c0_6, %c0_7, %c0_8] : memref<15x1x8x128xbf16, #tpu.memory_space<vmem>>, vector<1x1x8x128xbf16>
    %12 = vector.shape_cast %11 : vector<1x1x8x128xbf16> to vector<8x128xbf16>
    %13 = arith.extf %12 : vector<8x128xbf16> to vector<8x128xf32>
    %14 = vector.broadcast %3 : f32 to vector<8x128xf32>
    %15 = arith.mulf %14, %13 : vector<8x128xf32>
    %16 = arith.addf %10, %15 : vector<8x128xf32>
    %c2_9 = arith.constant 2 : index
    %c0_10 = arith.constant 0 : index
    %c0_11 = arith.constant 0 : index
    %c0_12 = arith.constant 0 : index
    %17 = vector.load %arg3[%c2_9, %c0_10, %c0_11, %c0_12] : memref<15x1x8x128xbf16, #tpu.memory_space<vmem>>, vector<1x1x8x128xbf16>
    %18 = vector.shape_cast %17 : vector<1x1x8x128xbf16> to vector<8x128xbf16>
    %19 = arith.extf %18 : vector<8x128xbf16> to vector<8x128xf32>
    %20 = vector.broadcast %4 : f32 to vector<8x128xf32>
    %21 = arith.mulf %20, %19 : vector<8x128xf32>
    %22 = arith.addf %16, %21 : vector<8x128xf32>
    %23 = vector.broadcast %1 : f32 to vector<8x128xf32>
    %24 = arith.mulf %23, %8 : vector<8x128xf32>
    %25 = vector.broadcast %2 : f32 to vector<8x128xf32>
    %26 = arith.mulf %25, %13 : vector<8x128xf32>
    %27 = arith.addf %24, %26 : vector<8x128xf32>
    %28 = vector.broadcast %3 : f32 to vector<8x128xf32>
    %29 = arith.mulf %28, %19 : vector<8x128xf32>
    %30 = arith.addf %27, %29 : vector<8x128xf32>
    %c3_13 = arith.constant 3 : index
    %c0_14 = arith.constant 0 : index
    %c0_15 = arith.constant 0 : index
    %c0_16 = arith.constant 0 : index
    %31 = vector.load %arg3[%c3_13, %c0_14, %c0_15, %c0_16] : memref<15x1x8x128xbf16, #tpu.memory_space<vmem>>, vector<1x1x8x128xbf16>
    %32 = vector.shape_cast %31 : vector<1x1x8x128xbf16> to vector<8x128xbf16>
    %33 = arith.extf %32 : vector<8x128xbf16> to vector<8x128xf32>
    %34 = vector.broadcast %4 : f32 to vector<8x128xf32>
    %35 = arith.mulf %34, %33 : vector<8x128xf32>
    %36 = arith.addf %30, %35 : vector<8x128xf32>
    %37 = arith.maximumf %22, %36 : vector<8x128xf32>
    %38 = vector.broadcast %0 : f32 to vector<8x128xf32>
    %39 = arith.mulf %38, %8 : vector<8x128xf32>
    %40 = vector.broadcast %1 : f32 to vector<8x128xf32>
    %41 = arith.mulf %40, %13 : vector<8x128xf32>
    %42 = arith.addf %39, %41 : vector<8x128xf32>
    %43 = vector.broadcast %2 : f32 to vector<8x128xf32>
    %44 = arith.mulf %43, %19 : vector<8x128xf32>
    %45 = arith.addf %42, %44 : vector<8x128xf32>
    %46 = vector.broadcast %3 : f32 to vector<8x128xf32>
    %47 = arith.mulf %46, %33 : vector<8x128xf32>
    %48 = arith.addf %45, %47 : vector<8x128xf32>
    %c4_17 = arith.constant 4 : index
    %c0_18 = arith.constant 0 : index
    %c0_19 = arith.constant 0 : index
    %c0_20 = arith.constant 0 : index
    %49 = vector.load %arg3[%c4_17, %c0_18, %c0_19, %c0_20] : memref<15x1x8x128xbf16, #tpu.memory_space<vmem>>, vector<1x1x8x128xbf16>
    %50 = vector.shape_cast %49 : vector<1x1x8x128xbf16> to vector<8x128xbf16>
    %51 = arith.extf %50 : vector<8x128xbf16> to vector<8x128xf32>
    %52 = vector.broadcast %4 : f32 to vector<8x128xf32>
    %53 = arith.mulf %52, %51 : vector<8x128xf32>
    %54 = arith.addf %48, %53 : vector<8x128xf32>
    %55 = arith.maximumf %37, %54 : vector<8x128xf32>
    %56 = vector.broadcast %0 : f32 to vector<8x128xf32>
    %57 = arith.mulf %56, %13 : vector<8x128xf32>
    %58 = vector.broadcast %1 : f32 to vector<8x128xf32>
    %59 = arith.mulf %58, %19 : vector<8x128xf32>
    %60 = arith.addf %57, %59 : vector<8x128xf32>
    %61 = vector.broadcast %2 : f32 to vector<8x128xf32>
    %62 = arith.mulf %61, %33 : vector<8x128xf32>
    %63 = arith.addf %60, %62 : vector<8x128xf32>
    %64 = vector.broadcast %3 : f32 to vector<8x128xf32>
    %65 = arith.mulf %64, %51 : vector<8x128xf32>
    %66 = arith.addf %63, %65 : vector<8x128xf32>
    %c5 = arith.constant 5 : index
    %c0_21 = arith.constant 0 : index
    %c0_22 = arith.constant 0 : index
    %c0_23 = arith.constant 0 : index
    %67 = vector.load %arg3[%c5, %c0_21, %c0_22, %c0_23] : memref<15x1x8x128xbf16, #tpu.memory_space<vmem>>, vector<1x1x8x128xbf16>
    %68 = vector.shape_cast %67 : vector<1x1x8x128xbf16> to vector<8x128xbf16>
    %69 = arith.extf %68 : vector<8x128xbf16> to vector<8x128xf32>
    %70 = vector.broadcast %4 : f32 to vector<8x128xf32>
    %71 = arith.mulf %70, %69 : vector<8x128xf32>
    %72 = arith.addf %66, %71 : vector<8x128xf32>
    %73 = arith.maximumf %55, %72 : vector<8x128xf32>
    %74 = vector.broadcast %0 : f32 to vector<8x128xf32>
    %75 = arith.mulf %74, %19 : vector<8x128xf32>
    %76 = vector.broadcast %1 : f32 to vector<8x128xf32>
    %77 = arith.mulf %76, %33 : vector<8x128xf32>
    %78 = arith.addf %75, %77 : vector<8x128xf32>
    %79 = vector.broadcast %2 : f32 to vector<8x128xf32>
    %80 = arith.mulf %79, %51 : vector<8x128xf32>
    %81 = arith.addf %78, %80 : vector<8x128xf32>
    %82 = vector.broadcast %3 : f32 to vector<8x128xf32>
    %83 = arith.mulf %82, %69 : vector<8x128xf32>
    %84 = arith.addf %81, %83 : vector<8x128xf32>
    %c6 = arith.constant 6 : index
    %c0_24 = arith.constant 0 : index
    %c0_25 = arith.constant 0 : index
    %c0_26 = arith.constant 0 : index
    %85 = vector.load %arg3[%c6, %c0_24, %c0_25, %c0_26] : memref<15x1x8x128xbf16, #tpu.memory_space<vmem>>, vector<1x1x8x128xbf16>
    %86 = vector.shape_cast %85 : vector<1x1x8x128xbf16> to vector<8x128xbf16>
    %87 = arith.extf %86 : vector<8x128xbf16> to vector<8x128xf32>
    %88 = vector.broadcast %4 : f32 to vector<8x128xf32>
    %89 = arith.mulf %88, %87 : vector<8x128xf32>
    %90 = arith.addf %84, %89 : vector<8x128xf32>
    %91 = arith.maximumf %73, %90 : vector<8x128xf32>
    %92 = vector.broadcast %0 : f32 to vector<8x128xf32>
    %93 = arith.mulf %92, %33 : vector<8x128xf32>
    %94 = vector.broadcast %1 : f32 to vector<8x128xf32>
    %95 = arith.mulf %94, %51 : vector<8x128xf32>
    %96 = arith.addf %93, %95 : vector<8x128xf32>
    %97 = vector.broadcast %2 : f32 to vector<8x128xf32>
    %98 = arith.mulf %97, %69 : vector<8x128xf32>
    %99 = arith.addf %96, %98 : vector<8x128xf32>
    %100 = vector.broadcast %3 : f32 to vector<8x128xf32>
    %101 = arith.mulf %100, %87 : vector<8x128xf32>
    %102 = arith.addf %99, %101 : vector<8x128xf32>
    %c7 = arith.constant 7 : index
    %c0_27 = arith.constant 0 : index
    %c0_28 = arith.constant 0 : index
    %c0_29 = arith.constant 0 : index
    %103 = vector.load %arg3[%c7, %c0_27, %c0_28, %c0_29] : memref<15x1x8x128xbf16, #tpu.memory_space<vmem>>, vector<1x1x8x128xbf16>
    %104 = vector.shape_cast %103 : vector<1x1x8x128xbf16> to vector<8x128xbf16>
    %105 = arith.extf %104 : vector<8x128xbf16> to vector<8x128xf32>
    %106 = vector.broadcast %4 : f32 to vector<8x128xf32>
    %107 = arith.mulf %106, %105 : vector<8x128xf32>
    %108 = arith.addf %102, %107 : vector<8x128xf32>
    %109 = arith.maximumf %91, %108 : vector<8x128xf32>
    %110 = vector.broadcast %0 : f32 to vector<8x128xf32>
    %111 = arith.mulf %110, %51 : vector<8x128xf32>
    %112 = vector.broadcast %1 : f32 to vector<8x128xf32>
    %113 = arith.mulf %112, %69 : vector<8x128xf32>
    %114 = arith.addf %111, %113 : vector<8x128xf32>
    %115 = vector.broadcast %2 : f32 to vector<8x128xf32>
    %116 = arith.mulf %115, %87 : vector<8x128xf32>
    %117 = arith.addf %114, %116 : vector<8x128xf32>
    %118 = vector.broadcast %3 : f32 to vector<8x128xf32>
    %119 = arith.mulf %118, %105 : vector<8x128xf32>
    %120 = arith.addf %117, %119 : vector<8x128xf32>
    %c8 = arith.constant 8 : index
    %c0_30 = arith.constant 0 : index
    %c0_31 = arith.constant 0 : index
    %c0_32 = arith.constant 0 : index
    %121 = vector.load %arg3[%c8, %c0_30, %c0_31, %c0_32] : memref<15x1x8x128xbf16, #tpu.memory_space<vmem>>, vector<1x1x8x128xbf16>
    %122 = vector.shape_cast %121 : vector<1x1x8x128xbf16> to vector<8x128xbf16>
    %123 = arith.extf %122 : vector<8x128xbf16> to vector<8x128xf32>
    %124 = vector.broadcast %4 : f32 to vector<8x128xf32>
    %125 = arith.mulf %124, %123 : vector<8x128xf32>
    %126 = arith.addf %120, %125 : vector<8x128xf32>
    %127 = arith.maximumf %109, %126 : vector<8x128xf32>
    %128 = vector.broadcast %0 : f32 to vector<8x128xf32>
    %129 = arith.mulf %128, %69 : vector<8x128xf32>
    %130 = vector.broadcast %1 : f32 to vector<8x128xf32>
    %131 = arith.mulf %130, %87 : vector<8x128xf32>
    %132 = arith.addf %129, %131 : vector<8x128xf32>
    %133 = vector.broadcast %2 : f32 to vector<8x128xf32>
    %134 = arith.mulf %133, %105 : vector<8x128xf32>
    %135 = arith.addf %132, %134 : vector<8x128xf32>
    %136 = vector.broadcast %3 : f32 to vector<8x128xf32>
    %137 = arith.mulf %136, %123 : vector<8x128xf32>
    %138 = arith.addf %135, %137 : vector<8x128xf32>
    %c9 = arith.constant 9 : index
    %c0_33 = arith.constant 0 : index
    %c0_34 = arith.constant 0 : index
    %c0_35 = arith.constant 0 : index
    %139 = vector.load %arg3[%c9, %c0_33, %c0_34, %c0_35] : memref<15x1x8x128xbf16, #tpu.memory_space<vmem>>, vector<1x1x8x128xbf16>
    %140 = vector.shape_cast %139 : vector<1x1x8x128xbf16> to vector<8x128xbf16>
    %141 = arith.extf %140 : vector<8x128xbf16> to vector<8x128xf32>
    %142 = vector.broadcast %4 : f32 to vector<8x128xf32>
    %143 = arith.mulf %142, %141 : vector<8x128xf32>
    %144 = arith.addf %138, %143 : vector<8x128xf32>
    %145 = arith.maximumf %127, %144 : vector<8x128xf32>
    %146 = vector.broadcast %0 : f32 to vector<8x128xf32>
    %147 = arith.mulf %146, %87 : vector<8x128xf32>
    %148 = vector.broadcast %1 : f32 to vector<8x128xf32>
    %149 = arith.mulf %148, %105 : vector<8x128xf32>
    %150 = arith.addf %147, %149 : vector<8x128xf32>
    %151 = vector.broadcast %2 : f32 to vector<8x128xf32>
    %152 = arith.mulf %151, %123 : vector<8x128xf32>
    %153 = arith.addf %150, %152 : vector<8x128xf32>
    %154 = vector.broadcast %3 : f32 to vector<8x128xf32>
    %155 = arith.mulf %154, %141 : vector<8x128xf32>
    %156 = arith.addf %153, %155 : vector<8x128xf32>
    %c10 = arith.constant 10 : index
    %c0_36 = arith.constant 0 : index
    %c0_37 = arith.constant 0 : index
    %c0_38 = arith.constant 0 : index
    %157 = vector.load %arg3[%c10, %c0_36, %c0_37, %c0_38] : memref<15x1x8x128xbf16, #tpu.memory_space<vmem>>, vector<1x1x8x128xbf16>
    %158 = vector.shape_cast %157 : vector<1x1x8x128xbf16> to vector<8x128xbf16>
    %159 = arith.extf %158 : vector<8x128xbf16> to vector<8x128xf32>
    %160 = vector.broadcast %4 : f32 to vector<8x128xf32>
    %161 = arith.mulf %160, %159 : vector<8x128xf32>
    %162 = arith.addf %156, %161 : vector<8x128xf32>
    %163 = arith.maximumf %145, %162 : vector<8x128xf32>
    %164 = vector.broadcast %0 : f32 to vector<8x128xf32>
    %165 = arith.mulf %164, %105 : vector<8x128xf32>
    %166 = vector.broadcast %1 : f32 to vector<8x128xf32>
    %167 = arith.mulf %166, %123 : vector<8x128xf32>
    %168 = arith.addf %165, %167 : vector<8x128xf32>
    %169 = vector.broadcast %2 : f32 to vector<8x128xf32>
    %170 = arith.mulf %169, %141 : vector<8x128xf32>
    %171 = arith.addf %168, %170 : vector<8x128xf32>
    %172 = vector.broadcast %3 : f32 to vector<8x128xf32>
    %173 = arith.mulf %172, %159 : vector<8x128xf32>
    %174 = arith.addf %171, %173 : vector<8x128xf32>
    %c11 = arith.constant 11 : index
    %c0_39 = arith.constant 0 : index
    %c0_40 = arith.constant 0 : index
    %c0_41 = arith.constant 0 : index
    %175 = vector.load %arg3[%c11, %c0_39, %c0_40, %c0_41] : memref<15x1x8x128xbf16, #tpu.memory_space<vmem>>, vector<1x1x8x128xbf16>
    %176 = vector.shape_cast %175 : vector<1x1x8x128xbf16> to vector<8x128xbf16>
    %177 = arith.extf %176 : vector<8x128xbf16> to vector<8x128xf32>
    %178 = vector.broadcast %4 : f32 to vector<8x128xf32>
    %179 = arith.mulf %178, %177 : vector<8x128xf32>
    %180 = arith.addf %174, %179 : vector<8x128xf32>
    %181 = arith.maximumf %163, %180 : vector<8x128xf32>
    %182 = vector.broadcast %0 : f32 to vector<8x128xf32>
    %183 = arith.mulf %182, %123 : vector<8x128xf32>
    %184 = vector.broadcast %1 : f32 to vector<8x128xf32>
    %185 = arith.mulf %184, %141 : vector<8x128xf32>
    %186 = arith.addf %183, %185 : vector<8x128xf32>
    %187 = vector.broadcast %2 : f32 to vector<8x128xf32>
    %188 = arith.mulf %187, %159 : vector<8x128xf32>
    %189 = arith.addf %186, %188 : vector<8x128xf32>
    %190 = vector.broadcast %3 : f32 to vector<8x128xf32>
    %191 = arith.mulf %190, %177 : vector<8x128xf32>
    %192 = arith.addf %189, %191 : vector<8x128xf32>
    %c12 = arith.constant 12 : index
    %c0_42 = arith.constant 0 : index
    %c0_43 = arith.constant 0 : index
    %c0_44 = arith.constant 0 : index
    %193 = vector.load %arg3[%c12, %c0_42, %c0_43, %c0_44] : memref<15x1x8x128xbf16, #tpu.memory_space<vmem>>, vector<1x1x8x128xbf16>
    %194 = vector.shape_cast %193 : vector<1x1x8x128xbf16> to vector<8x128xbf16>
    %195 = arith.extf %194 : vector<8x128xbf16> to vector<8x128xf32>
    %196 = vector.broadcast %4 : f32 to vector<8x128xf32>
    %197 = arith.mulf %196, %195 : vector<8x128xf32>
    %198 = arith.addf %192, %197 : vector<8x128xf32>
    %199 = arith.maximumf %181, %198 : vector<8x128xf32>
    %200 = vector.broadcast %0 : f32 to vector<8x128xf32>
    %201 = arith.mulf %200, %141 : vector<8x128xf32>
    %202 = vector.broadcast %1 : f32 to vector<8x128xf32>
    %203 = arith.mulf %202, %159 : vector<8x128xf32>
    %204 = arith.addf %201, %203 : vector<8x128xf32>
    %205 = vector.broadcast %2 : f32 to vector<8x128xf32>
    %206 = arith.mulf %205, %177 : vector<8x128xf32>
    %207 = arith.addf %204, %206 : vector<8x128xf32>
    %208 = vector.broadcast %3 : f32 to vector<8x128xf32>
    %209 = arith.mulf %208, %195 : vector<8x128xf32>
    %210 = arith.addf %207, %209 : vector<8x128xf32>
    %c13 = arith.constant 13 : index
    %c0_45 = arith.constant 0 : index
    %c0_46 = arith.constant 0 : index
    %c0_47 = arith.constant 0 : index
    %211 = vector.load %arg3[%c13, %c0_45, %c0_46, %c0_47] : memref<15x1x8x128xbf16, #tpu.memory_space<vmem>>, vector<1x1x8x128xbf16>
    %212 = vector.shape_cast %211 : vector<1x1x8x128xbf16> to vector<8x128xbf16>
    %213 = arith.extf %212 : vector<8x128xbf16> to vector<8x128xf32>
    %214 = vector.broadcast %4 : f32 to vector<8x128xf32>
    %215 = arith.mulf %214, %213 : vector<8x128xf32>
    %216 = arith.addf %210, %215 : vector<8x128xf32>
    %217 = arith.maximumf %199, %216 : vector<8x128xf32>
    %218 = vector.broadcast %0 : f32 to vector<8x128xf32>
    %219 = arith.mulf %218, %159 : vector<8x128xf32>
    %220 = vector.broadcast %1 : f32 to vector<8x128xf32>
    %221 = arith.mulf %220, %177 : vector<8x128xf32>
    %222 = arith.addf %219, %221 : vector<8x128xf32>
    %223 = vector.broadcast %2 : f32 to vector<8x128xf32>
    %224 = arith.mulf %223, %195 : vector<8x128xf32>
    %225 = arith.addf %222, %224 : vector<8x128xf32>
    %226 = vector.broadcast %3 : f32 to vector<8x128xf32>
    %227 = arith.mulf %226, %213 : vector<8x128xf32>
    %228 = arith.addf %225, %227 : vector<8x128xf32>
    %c14 = arith.constant 14 : index
    %c0_48 = arith.constant 0 : index
    %c0_49 = arith.constant 0 : index
    %c0_50 = arith.constant 0 : index
    %229 = vector.load %arg3[%c14, %c0_48, %c0_49, %c0_50] : memref<15x1x8x128xbf16, #tpu.memory_space<vmem>>, vector<1x1x8x128xbf16>
    %230 = vector.shape_cast %229 : vector<1x1x8x128xbf16> to vector<8x128xbf16>
    %231 = arith.extf %230 : vector<8x128xbf16> to vector<8x128xf32>
    %232 = vector.broadcast %4 : f32 to vector<8x128xf32>
    %233 = arith.mulf %232, %231 : vector<8x128xf32>
    %234 = arith.addf %228, %233 : vector<8x128xf32>
    %235 = arith.maximumf %217, %234 : vector<8x128xf32>
    %236 = vector.broadcast %0 : f32 to vector<8x128xf32>
    %237 = arith.mulf %236, %177 : vector<8x128xf32>
    %238 = vector.broadcast %1 : f32 to vector<8x128xf32>
    %239 = arith.mulf %238, %195 : vector<8x128xf32>
    %240 = arith.addf %237, %239 : vector<8x128xf32>
    %241 = vector.broadcast %2 : f32 to vector<8x128xf32>
    %242 = arith.mulf %241, %213 : vector<8x128xf32>
    %243 = arith.addf %240, %242 : vector<8x128xf32>
    %244 = vector.broadcast %3 : f32 to vector<8x128xf32>
    %245 = arith.mulf %244, %231 : vector<8x128xf32>
    %246 = arith.addf %243, %245 : vector<8x128xf32>
    %247 = arith.maximumf %235, %246 : vector<8x128xf32>
    %248 = vector.broadcast %0 : f32 to vector<8x128xf32>
    %249 = arith.mulf %248, %195 : vector<8x128xf32>
    %250 = vector.broadcast %1 : f32 to vector<8x128xf32>
    %251 = arith.mulf %250, %213 : vector<8x128xf32>
    %252 = arith.addf %249, %251 : vector<8x128xf32>
    %253 = vector.broadcast %2 : f32 to vector<8x128xf32>
    %254 = arith.mulf %253, %231 : vector<8x128xf32>
    %255 = arith.addf %252, %254 : vector<8x128xf32>
    %256 = arith.maximumf %247, %255 : vector<8x128xf32>
    %257 = vector.broadcast %5 : f32 to vector<8x128xf32>
    %258 = arith.addf %256, %257 : vector<8x128xf32>
    %c0_51 = arith.constant 0 : index
    %c0_52 = arith.constant 0 : index
    %c0_53 = arith.constant 0 : index
    %259 = vector.load %arg4[%c0_51, %c0_52, %c0_53] : memref<1x8x128xf32, #tpu.memory_space<vmem>>, vector<1x8x128xf32>
    %260 = vector.shape_cast %259 : vector<1x8x128xf32> to vector<8x128xf32>
    %261 = vector.shape_cast %258 : vector<8x128xf32> to vector<1x8x128xf32>
    tpu.vector_store %arg4[%c0_51, %c0_52, %c0_53], %261 {strides = array<i32>} : memref<1x8x128xf32, #tpu.memory_space<vmem>>, vector<1x8x128xf32>,
    return
  }
  func.func @transform_0(%arg0: i32) -> i32 {
    %c0_i32 = arith.constant 0 : i32
    %c0_i32_0 = arith.constant 0 : i32
    return %c0_i32 : i32
  }
  func.func @transform_1(%arg0: i32) -> i32 {
    %c0_i32 = arith.constant 0 : i32
    %c0_i32_0 = arith.constant 0 : i32
    return %c0_i32 : i32
  }
  func.func @transform_2(%arg0: i32) -> (i32, i32, i32, i32) {
    %c0_i32 = arith.constant 0 : i32
    %c0_i32_0 = arith.constant 0 : i32
    %c0_i32_1 = arith.constant 0 : i32
    %c0_i32_2 = arith.constant 0 : i32
    return %c0_i32, %arg0, %c0_i32_0, %c0_i32_1 : i32, i32, i32, i32
  }
  func.func @transform_3(%arg0: i32) -> (i32, i32, i32) {
    %c0_i32 = arith.constant 0 : i32
    %c0_i32_0 = arith.constant 0 : i32
    %c0_i32_1 = arith.constant 0 : i32
    return %arg0, %c0_i32, %c0_i32_0 : i32, i32, i32
  }
}

</mosaic_0001>

<bundles_post_ra>
// kernel: tpu_custom_call.1
= control target key start
LH: loop header
LB: loop body
LE: loop exit
PB: predicated region body
PF: predicated region fallthrough
CT: control target
= control target key end

     0   :  { %9 = vsyncpa [#allocation6], 0  ;;  %s520_s0 = inlined_call_operand.vmem [shape: f32[5], index: 0, kind: input, shape index: {}]   ;;  %s521_s1 = inlined_call_operand.<no memory space> [shape: f32[1], index: 1, kind: input, shape index: {}]   ;;  %s522_s2 = inlined_call_operand.hbm [shape: bf16[15,1,8,128], index: 2, kind: input, shape index: {}]   ;;  %s523_s3 = inlined_call_operand.hbm [shape: f32[1,8,128], index: 3, kind: output, shape index: {}]  }
   0x1   :  { %10 = vsyncpa [#allocation4], 0 }
   0x2   :  { %11 = vsyncpa [#allocation5], 0  ;;  %s17_s14 = sshll.u32 %s520_s0, 4  ;;  %s27_s17 = sshll.u32 %s522_s2, 4  ;;  %s18_s14 = int_to_ptr.vmem [resolvable:$true] %s17_s14  ;;  %s28_s17 = int_to_ptr.hbm [resolvable:$true] %s27_s17 }
   0x3   :  { %s337_s18 = smov [#allocation3]   ;;  %s338_s19 = smov [#allocation7]  }
   0x4   :  { %20 = dma.vmem_to_smem %s18_s14, 16, %s337_s18, [#allocation6]  }
   0x5   :  { %s29_s20 = sshll.u32 %s338_s19, 4  ;;  %s339_s21 = smov 64   ;;  %s30_s20 = int_to_ptr.vmem [resolvable:$true] %s29_s20 }
   0x6   :  { %s340_s22 = smov 4  }
   0x7   :  { %35 = dma.hbm_to_vmem [thread:$0]  %s28_s17, 960, %s30_s20, [#allocation4], %s339_s21, %s339_s21, %s340_s22  }
   0x8   :  { %331 = dma.done.wait [#allocation6], 16  }
   0x9   :  { %332 = vsyncadd [#allocation6], 4294967280 }
   0xa   :  { %333 = dma.done.wait [#allocation4], 960  }
   0xb   :  { %334 = vsyncadd [#allocation4], 4294966336 }
   0xc   :  { %44 = sfence }
   0xd   :  { %s45_s0 = sld [smem:[#allocation3]]  ;;  %v263_v0 = vld [vmem:[#allocation7] sm:$0xff]   ;;  %v62_v1 = vld [vmem:[#allocation7 + $0x8] sm:$0xff]   ;;  %v88_v2 = vld [vmem:[#allocation7 + $0x10] sm:$0xff]   ;;  %s341_s28 = smov [#allocation8]  }
   0xe   :  { %s258_s23 = sld [smem:[#allocation3 + $0x1]]  ;;  %v114_v3 = vld [vmem:[#allocation7 + $0x18] sm:$0xff]   ;;  %v140_v4 = vld [vmem:[#allocation7 + $0x20] sm:$0xff]   ;;  %v166_v5 = vld [vmem:[#allocation7 + $0x28] sm:$0xff]   ;;  %v264_v6 = vunpack.c.l.bf16 %v263_v0  ;;  %v265_v7 = vunpack.c.h.bf16 %v263_v0  ;;  %v63_v8 = vunpack.c.l.bf16 %v62_v1  ;;  %v75_v9 = vunpack.c.h.bf16 %v62_v1  ;;  %s245_s29 = sshll.u32 %s341_s28, 4  ;;  %s246_s29 = int_to_ptr.vmem [resolvable:$true] %s245_s29 }
   0xf   :  { %s259_s2 = sld [smem:[#allocation3 + $0x2]]  ;;  %v192_v10 = vld [vmem:[#allocation7 + $0x30] sm:$0xff]   ;;  %v89_v11 = vunpack.c.l.bf16 %v88_v2  ;;  %v368_v12 = vunpack.c.h.bf16 %v88_v2  ;;  %v370_v13 = vunpack.c.l.bf16 %v114_v3  ;;  %v372_v14 = vunpack.c.h.bf16 %v114_v3  ;;  %v218_v19 = vld [vmem:[#allocation7 + $0x38] sm:$0xf]  ;;  %s247_s5 = sshll.u32 %s523_s3, 4  ;;  %s248_s5 = int_to_ptr.hbm [resolvable:$true] %s247_s5 }
  0x10   :  { %s260_s24 = sld [smem:[#allocation3 + $0x3]]  ;;  %v374_v15 = vunpack.c.l.bf16 %v140_v4  ;;  %v376_v16 = vunpack.c.h.bf16 %v140_v4  ;;  %v378_v17 = vunpack.c.l.bf16 %v166_v5  ;;  %v380_v18 = vunpack.c.h.bf16 %v166_v5 }
  0x11   :  { %s261_s25 = sld [smem:[#allocation3 + $0x4]]  ;;  %v384_v21 = vunpack.c.l.bf16 %v192_v10  ;;  %v386_v22 = vunpack.c.h.bf16 %v192_v10  ;;  %v388_v23 = vunpack.c.l.bf16 %v218_v19 }
  0x13   :  { %v382_v20 = vstv %s45_s0 }
  0x14   :  { %v390_v24 = vstv %s258_s23  ;;  %v80_v25 = vmul.f32 %v264_v6, %v382_v20  ;;  %v93_v26 = vmul.f32 %v265_v7, %v382_v20  ;;  %v106_v27 = vmul.f32 %v382_v20, %v63_v8 }
  0x15   :  { %v395_v28 = vstv %s259_s2  ;;  %v68_v29 = vmul.f32 %v264_v6, %v390_v24  ;;  %v81_v30 = vmul.f32 %v265_v7, %v390_v24  ;;  %v94_v31 = vmul.f32 %v390_v24, %v63_v8 }
  0x16   :  { %v54_v32 = vmul.f32 %v264_v6, %v395_v28  ;;  %v401_v33 = vstv %s260_s24  ;;  %v69_v34 = vmul.f32 %v265_v7, %v395_v28  ;;  %v83_v35 = vmul.f32 %v63_v8, %v395_v28 }
  0x17   :  { %v59_v36 = vmul.f32 %v265_v7, %v401_v33  ;;  %v406_v37 = vstv %s261_s25  ;;  %v71_v38 = vmul.f32 %v63_v8, %v401_v33  ;;  %v82_v39 = vadd.f32 %v81_v30, %v80_v25 }
  0x18   :  { %v65_v40 = vmul.f32 %v406_v37, %v63_v8  ;;  %v70_v41 = vadd.f32 %v69_v34, %v68_v29  ;;  %v76_v42 = vmul.f32 %v75_v9, %v406_v37  ;;  %v85_v43 = vmul.f32 %v75_v9, %v401_v33 }
  0x19   :  { %v60_v44 = vadd.f32 %v59_v36, %v54_v32  ;;  %v84_v45 = vadd.f32 %v83_v35, %v82_v39  ;;  %v90_v46 = vmul.f32 %v89_v11, %v406_v37  ;;  %v95_v47 = vadd.f32 %v94_v31, %v93_v26 }
  0x1a   :  { %v72_v48 = vadd.f32 %v71_v38, %v70_v41  ;;  %v96_v49 = vmul.f32 %v75_v9, %v395_v28  ;;  %v98_v50 = vmul.f32 %v89_v11, %v401_v33  ;;  %v103_v51 = vmul.f32 %v368_v12, %v406_v37 }
  0x1b   :  { %v66_v52 = vadd.f32 %v65_v40, %v60_v44  ;;  %v86_v53 = vadd.f32 %v85_v43, %v84_v45  ;;  %v107_v54 = vmul.f32 %v75_v9, %v390_v24  ;;  %v109_v55 = vmul.f32 %v89_v11, %v395_v28 }
  0x1c   :  { %v77_v56 = vadd.f32 %v76_v42, %v72_v48  ;;  %v97_v57 = vadd.f32 %v96_v49, %v95_v47  ;;  %v111_v58 = vmul.f32 %v368_v12, %v401_v33  ;;  %v116_v59 = vmul.f32 %v370_v13, %v406_v37 }
  0x1d   :  { %v91_v60 = vadd.f32 %v90_v46, %v86_v53  ;;  %v108_v61 = vadd.f32 %v107_v54, %v106_v27  ;;  %v119_v62 = vmul.f32 %v382_v20, %v75_v9  ;;  %v120_v63 = vmul.f32 %v89_v11, %v390_v24 }
  0x1e   :  { %v78_v0 = vmax.f32 %v66_v52, %v77_v56  ;;  %v99_v1 = vadd.f32 %v98_v50, %v97_v57  ;;  %v122_v2 = vmul.f32 %v368_v12, %v395_v28  ;;  %v124_v3 = vmul.f32 %v370_v13, %v401_v33 }
  0x1f   :  { %v110_v4 = vadd.f32 %v109_v55, %v108_v61  ;;  %v121_v5 = vadd.f32 %v120_v63, %v119_v62  ;;  %v129_v6 = vmul.f32 %v372_v14, %v406_v37  ;;  %v132_v7 = vmul.f32 %v89_v11, %v382_v20 }
  0x20   :  { %v92_v8 = vmax.f32 %v78_v0, %v91_v60  ;;  %v104_v10 = vadd.f32 %v103_v51, %v99_v1  ;;  %v133_v9 = vmul.f32 %v368_v12, %v390_v24  ;;  %v135_v19 = vmul.f32 %v370_v13, %v395_v28 }
  0x21   :  { %v112_v25 = vadd.f32 %v111_v58, %v110_v4  ;;  %v123_v26 = vadd.f32 %v122_v2, %v121_v5  ;;  %v137_v27 = vmul.f32 %v372_v14, %v401_v33  ;;  %v142_v29 = vmul.f32 %v374_v15, %v406_v37 }
  0x22   :  { %v105_v30 = vmax.f32 %v92_v8, %v104_v10  ;;  %v134_v31 = vadd.f32 %v133_v9, %v132_v7  ;;  %v145_v11 = vmul.f32 %v368_v12, %v382_v20  ;;  %v146_v32 = vmul.f32 %v370_v13, %v390_v24 }
  0x23   :  { %v117_v34 = vadd.f32 %v116_v59, %v112_v25  ;;  %v125_v35 = vadd.f32 %v124_v3, %v123_v26  ;;  %v148_v36 = vmul.f32 %v372_v14, %v395_v28  ;;  %v150_v38 = vmul.f32 %v374_v15, %v401_v33 }
  0x24   :  { %v136_v39 = vadd.f32 %v135_v19, %v134_v31  ;;  %v147_v40 = vadd.f32 %v146_v32, %v145_v11  ;;  %v155_v41 = vmul.f32 %v376_v16, %v406_v37  ;;  %v158_v42 = vmul.f32 %v370_v13, %v382_v20 }
  0x25   :  { %v118_v12 = vmax.f32 %v105_v30, %v117_v34  ;;  %v130_v43 = vadd.f32 %v129_v6, %v125_v35  ;;  %v159_v44 = vmul.f32 %v372_v14, %v390_v24  ;;  %v161_v45 = vmul.f32 %v374_v15, %v395_v28 }
  0x26   :  { %v138_v46 = vadd.f32 %v137_v27, %v136_v39  ;;  %v149_v47 = vadd.f32 %v148_v36, %v147_v40  ;;  %v163_v48 = vmul.f32 %v376_v16, %v401_v33  ;;  %v168_v49 = vmul.f32 %v378_v17, %v406_v37 }
  0x27   :  { %v131_v50 = vmax.f32 %v118_v12, %v130_v43  ;;  %v160_v51 = vadd.f32 %v159_v44, %v158_v42  ;;  %v171_v13 = vmul.f32 %v372_v14, %v382_v20  ;;  %v172_v52 = vmul.f32 %v374_v15, %v390_v24 }
  0x28   :  { %v143_v53 = vadd.f32 %v142_v29, %v138_v46  ;;  %v151_v54 = vadd.f32 %v150_v38, %v149_v47  ;;  %v174_v55 = vmul.f32 %v376_v16, %v395_v28  ;;  %v176_v56 = vmul.f32 %v378_v17, %v401_v33 }
  0x29   :  { %v162_v57 = vadd.f32 %v161_v45, %v160_v51  ;;  %v173_v58 = vadd.f32 %v172_v52, %v171_v13  ;;  %v181_v59 = vmul.f32 %v380_v18, %v406_v37  ;;  %v184_v60 = vmul.f32 %v374_v15, %v382_v20 }
  0x2a   :  { %v144_v14 = vmax.f32 %v131_v50, %v143_v53  ;;  %v156_v61 = vadd.f32 %v155_v41, %v151_v54  ;;  %v185_v62 = vmul.f32 %v376_v16, %v390_v24  ;;  %v187_v63 = vmul.f32 %v378_v17, %v395_v28 }
  0x2b   :  { %v164_v0 = vadd.f32 %v163_v48, %v162_v57  ;;  %v175_v1 = vadd.f32 %v174_v55, %v173_v58  ;;  %v189_v2 = vmul.f32 %v380_v18, %v401_v33  ;;  %v194_v3 = vmul.f32 %v384_v21, %v406_v37 }
  0x2c   :  { %v157_v4 = vmax.f32 %v144_v14, %v156_v61  ;;  %v186_v5 = vadd.f32 %v185_v62, %v184_v60  ;;  %v197_v15 = vmul.f32 %v376_v16, %v382_v20  ;;  %v198_v6 = vmul.f32 %v378_v17, %v390_v24 }
  0x2d   :  { %v169_v7 = vadd.f32 %v168_v49, %v164_v0  ;;  %v177_v8 = vadd.f32 %v176_v56, %v175_v1  ;;  %v200_v10 = vmul.f32 %v380_v18, %v395_v28  ;;  %v202_v9 = vmul.f32 %v384_v21, %v401_v33 }
  0x2e   :  { %v188_v19 = vadd.f32 %v187_v63, %v186_v5  ;;  %v199_v25 = vadd.f32 %v198_v6, %v197_v15  ;;  %v207_v26 = vmul.f32 %v386_v22, %v406_v37  ;;  %v210_v27 = vmul.f32 %v378_v17, %v382_v20 }
  0x2f   :  { %v170_v16 = vmax.f32 %v157_v4, %v169_v7  ;;  %v182_v29 = vadd.f32 %v181_v59, %v177_v8  ;;  %v211_v30 = vmul.f32 %v380_v18, %v390_v24  ;;  %v213_v31 = vmul.f32 %v384_v21, %v395_v28 }
  0x30   :  { %v190_v11 = vadd.f32 %v189_v2, %v188_v19  ;;  %v201_v32 = vadd.f32 %v200_v10, %v199_v25  ;;  %v215_v34 = vmul.f32 %v386_v22, %v401_v33  ;;  %v220_v35 = vmul.f32 %v388_v23, %v406_v37 }
  0x31   :  { %v183_v36 = vmax.f32 %v170_v16, %v182_v29  ;;  %v212_v38 = vadd.f32 %v211_v30, %v210_v27  ;;  %v223_v17 = vmul.f32 %v380_v18, %v382_v20  ;;  %v224_v39 = vmul.f32 %v384_v21, %v390_v24 }
  0x32   :  { %v195_v40 = vadd.f32 %v194_v3, %v190_v11  ;;  %v203_v41 = vadd.f32 %v202_v9, %v201_v32  ;;  %v226_v42 = vmul.f32 %v386_v22, %v395_v28  ;;  %v228_v12 = vmul.f32 %v388_v23, %v401_v33 }
  0x33   :  { %v214_v43 = vadd.f32 %v213_v31, %v212_v38  ;;  %v225_v44 = vadd.f32 %v224_v39, %v223_v17  ;;  %v231_v37 = vmul.f32 %v384_v21, %v382_v20  ;;  %v232_v45 = vmul.f32 %v386_v22, %v390_v24 }
  0x34   :  { %v196_v18 = vmax.f32 %v183_v36, %v195_v40  ;;  %v208_v46 = vadd.f32 %v207_v26, %v203_v41  ;;  %v234_v50 = vmul.f32 %v388_v23, %v395_v28  ;;  %v237_v20 = vstv %s521_s1 }
  0x35   :  { %v216_v47 = vadd.f32 %v215_v34, %v214_v43  ;;  %v227_v48 = vadd.f32 %v226_v42, %v225_v44  ;;  %v233_v49 = vadd.f32 %v232_v45, %v231_v37 }
  0x36   :  { %v209_v51 = vmax.f32 %v196_v18, %v208_v46 }
  0x37   :  { %v221_v13 = vadd.f32 %v220_v35, %v216_v47  ;;  %v229_v52 = vadd.f32 %v228_v12, %v227_v48  ;;  %v235_v53 = vadd.f32 %v234_v50, %v233_v49 }
  0x39   :  { %v222_v33 = vmax.f32 %v209_v51, %v221_v13 }
  0x3b   :  { %v230_v54 = vmax.f32 %v222_v33, %v229_v52 }
  0x3d   :  { %v236_v21 = vmax.f32 %v230_v54, %v235_v53 }
  0x3f   :  { %v238_v22 = vadd.f32 %v237_v20, %v236_v21 }
  0x41   :  { %239 = vst [vmem:[#allocation8] sm:$0xff] %v238_v22 }
  0x42   :  { %250 = dma.vmem_to_hbm [thread:$0]  %s246_s29, 128, %s248_s5, [#allocation5]  }
  0x43   :  { %335 = dma.done.wait [#allocation5], 128  }
  0x44   :  { %336 = vsyncadd [#allocation5], 4294967168 }
  0x45   :  { %255 = vsyncpa [#allocation4], 1 }
  0x46   :  { %256 = vsyncpa [#allocation5], 1 }
  0x47   :  { %257 = vsyncpa [#allocation6], 1 }

</bundles_post_ra>
